<compile_context>
chip_gen: v7x
topology: tpu7x:2x2x1
jax: 0.10.0
libtpu: 0.0.40
codegen_flags: <defaults>
</compile_context>

<pallas_src>
import functools

import jax
import jax.numpy as jnp
from jax.experimental import pallas as pl
from jax.experimental.pallas import tpu as pltpu

LANE = 128            # feature width of the packed weight planes / activations
BIAS_ROW = LANE - 8   # 8-aligned, guaranteed-zero row used to stash the biases
RESIDENT_MAX_B = 1024 # whole-batch-resident path up to this batch size
EPS = 1e-5


# ----------------------------------------------------------------------------
# Parameter packing (run once, at parameter-load time).
# ----------------------------------------------------------------------------
def pack_params(params):
    """Fold BN affine into the following Linear and pack everything into one
    (2, LANE, LANE) slab.  Exact algebra:
        (xh*g + be) @ W + b  ==  xh @ (g^T * W) + (be @ W + b)
    Bias rows live at BIAS_ROW of each plane (that row is otherwise zero and
    the corresponding activation column is exactly zero, so the matmul is
    unaffected)."""
    w1, b1, w2, b2 = params["w1"], params["b1"], params["w2"], params["b2"]
    n_states, hidden = w1.shape
    n_actions = w2.shape[1]
    n_feat = ((n_states + 7) // 8) * 8          # x feature axis, sublane-rounded
    assert n_feat <= BIAS_ROW and hidden <= BIAS_ROW and n_actions <= LANE

    w1f = params["g1"].reshape(-1, 1) * w1                       # (n_states, hidden)
    b1f = (params["be1"] @ w1 + b1).reshape(-1)                  # (hidden,)
    w2f = params["g2"].reshape(-1, 1) * w2                       # (hidden, n_actions)
    b2f = (params["be2"] @ w2 + b2).reshape(-1)                  # (n_actions,)

    plane0 = jnp.zeros((LANE, LANE), jnp.float32)
    plane0 = plane0.at[:n_states, :hidden].set(w1f).at[BIAS_ROW, :hidden].set(b1f)
    plane1 = jnp.zeros((LANE, LANE), jnp.float32)
    plane1 = plane1.at[:hidden, :n_actions].set(w2f).at[BIAS_ROW, :n_actions].set(b2f)
    w_slab = jnp.stack([plane0, plane1])                         # (2, 128, 128)
    return dict(w_slab=w_slab, n_states=n_states, n_feat=n_feat,
                hidden=hidden, n_actions=n_actions)


# ----------------------------------------------------------------------------
# Path A: whole batch resident in VMEM (small / medium B).
# ----------------------------------------------------------------------------
def _resident_kernel(x_ref, w_ref, out_ref, *, n_feat):
    x = x_ref[...]                                               # (B, n_feat)

    # BatchNorm1d(n_states): batch stats, two-pass (subtract-mean) variance.
    mu1 = jnp.mean(x, axis=0, keepdims=True)
    xc = x - mu1
    var1 = jnp.mean(xc * xc, axis=0, keepdims=True)
    xh = xc * jax.lax.rsqrt(var1 + EPS)

    # Linear(n_states, 32) [BN affine folded in] + LeakyReLU(0.2).
    h = jnp.dot(xh, w_ref[0, :n_feat, :],
                preferred_element_type=jnp.float32) + w_ref[0, BIAS_ROW:BIAS_ROW + 1, :]
    h = jnp.maximum(h, 0.2 * h)                                  # (B, 128)

    # BatchNorm1d(32): batch stats, two-pass variance.
    mu2 = jnp.mean(h, axis=0, keepdims=True)
    hc = h - mu2
    var2 = jnp.mean(hc * hc, axis=0, keepdims=True)
    hh = hc * jax.lax.rsqrt(var2 + EPS)

    # Linear(32, n_actions) [BN affine folded in] + LeakyReLU(0.2) + Tanh.
    o = jnp.dot(hh, w_ref[1], preferred_element_type=jnp.float32) \
        + w_ref[1, BIAS_ROW:BIAS_ROW + 1, :]
    o = jnp.maximum(o, 0.2 * o)
    out_ref[...] = jnp.tanh(o)                                   # (B, 128)


@functools.partial(jax.jit, static_argnames=("n_feat", "n_actions"))
def _forward_resident(x, w_slab, *, n_feat, n_actions):
    batch, n_states = x.shape
    # Only round the feature axis up to a multiple of 8 (no-op for 16 states);
    # the fused pad never materializes an 8x lane-padded x in HBM.
    x_p = jnp.pad(x, ((0, 0), (0, n_feat - n_states)))
    vmem = pl.BlockSpec(memory_space=pltpu.MemorySpace.VMEM)
    out_p = pl.pallas_call(
        functools.partial(_resident_kernel, n_feat=n_feat),
        out_shape=jax.ShapeDtypeStruct((batch, LANE), jnp.float32),
        in_specs=[vmem, vmem],
        out_specs=vmem,
        cost_estimate=pl.CostEstimate(
            flops=2 * batch * LANE * (n_feat + LANE) + 16 * batch * (n_feat + LANE),
            transcendentals=batch * LANE,
            bytes_accessed=4 * (batch * n_feat + batch * LANE + 2 * LANE * LANE)),
    )(x_p, w_slab)
    # Slice stays under jit so it fuses with any downstream consumer.
    return out_p[:, :n_actions]


# ----------------------------------------------------------------------------
# Path B: batch-tiled 3-phase grid (large B).
# ----------------------------------------------------------------------------
def _tiled_kernel(x_ref, w_ref, out_ref, stat1_ref, stat2_ref, *,
                  n_feat, batch, tile_b):
    phase = pl.program_id(0)
    t = pl.program_id(1)
    inv_b = 1.0 / batch

    x = x_ref[...]                                               # (tile_b, n_feat)
    # Row-validity mask for this tile (zero-padded batch rows are excluded
    # from the hidden-layer statistics).  Used as the LHS of the stats matmuls
    # so the reductions run on the otherwise-idle MXU.
    rows = jax.lax.broadcasted_iota(jnp.int32, (1, tile_b), 1) + t * tile_b
    mask = (rows < batch).astype(jnp.float32)                    # (1, tile_b)

    def hidden_act():
        # BN1 (stats from scratch, affine folded into W1) + Linear1 + LeakyReLU.
        xh = (x - stat1_ref[0:1, :]) * stat1_ref[1:2, :]
        h = jnp.dot(xh, w_ref[0, :n_feat, :],
                    preferred_element_type=jnp.float32) + w_ref[0, BIAS_ROW:BIAS_ROW + 1, :]
        return jnp.maximum(h, 0.2 * h)                           # (tile_b, 128)

    # ---- phase 0: accumulate per-feature sum / sum-of-squares of x ----------
    @pl.when(phase == 0)
    def _():
        @pl.when(t == 0)
        def _():
            stat1_ref[...] = jnp.zeros_like(stat1_ref)
            stat2_ref[...] = jnp.zeros_like(stat2_ref)
        stat1_ref[0:1, :] += jnp.dot(mask, x, preferred_element_type=jnp.float32)
        stat1_ref[1:2, :] += jnp.dot(mask, x * x, preferred_element_type=jnp.float32)

    # ---- phase 1: finalize BN1 stats; accumulate stats of the hidden layer --
    @pl.when(phase == 1)
    def _():
        @pl.when(t == 0)
        def _():
            mu = stat1_ref[0:1, :] * inv_b
            ex2 = stat1_ref[1:2, :] * inv_b
            var = jnp.maximum(ex2 - mu * mu, 0.0)   # one-pass var (see TODO)
            stat1_ref[0:1, :] = mu
            stat1_ref[1:2, :] = jax.lax.rsqrt(var + EPS)
        h = hidden_act()
        stat2_ref[0:1, :] += jnp.dot(mask, h, preferred_element_type=jnp.float32)
        stat2_ref[1:2, :] += jnp.dot(mask, h * h, preferred_element_type=jnp.float32)

    # ---- phase 2: finalize BN2 stats; apply layer 2; write output tile ------
    @pl.when(phase == 2)
    def _():
        @pl.when(t == 0)
        def _():
            mu = stat2_ref[0:1, :] * inv_b
            ex2 = stat2_ref[1:2, :] * inv_b
            var = jnp.maximum(ex2 - mu * mu, 0.0)
            stat2_ref[0:1, :] = mu
            stat2_ref[1:2, :] = jax.lax.rsqrt(var + EPS)
        # Recomputing the cheap first layer beats round-tripping (B,128) h
        # through HBM.
        h = hidden_act()
        hh = (h - stat2_ref[0:1, :]) * stat2_ref[1:2, :]
        o = jnp.dot(hh, w_ref[1], preferred_element_type=jnp.float32) \
            + w_ref[1, BIAS_ROW:BIAS_ROW + 1, :]
        o = jnp.maximum(o, 0.2 * o)
        out_ref[...] = jnp.tanh(o)


@functools.partial(jax.jit, static_argnames=("n_feat", "n_actions", "tile_b"))
def _forward_tiled(x, w_slab, *, n_feat, n_actions, tile_b):
    batch, n_states = x.shape
    nt = pl.cdiv(batch, tile_b)
    b_pad = nt * tile_b
    # Zero-pad batch to a tile multiple + round the feature axis to 8 lanes.
    x_p = jnp.pad(x, ((0, b_pad - batch), (0, n_feat - n_states)))

    out_p = pl.pallas_call(
        functools.partial(_tiled_kernel, n_feat=n_feat, batch=batch, tile_b=tile_b),
        out_shape=jax.ShapeDtypeStruct((b_pad, LANE), jnp.float32),
        grid_spec=pltpu.PrefetchScalarGridSpec(
            num_scalar_prefetch=0,
            grid=(3, nt),                     # (phase, batch tile)
            in_specs=[
                pl.BlockSpec((tile_b, n_feat), lambda p, t: (t, 0)),
                pl.BlockSpec((2, LANE, LANE), lambda p, t: (0, 0, 0)),  # resident
            ],
            # Output tiles are only produced in phase 2; before that the index
            # is pinned to block 0 so nothing is written back.
            out_specs=pl.BlockSpec((tile_b, LANE), lambda p, t: (t * (p // 2), 0)),
            scratch_shapes=[
                pltpu.VMEM((2, n_feat), jnp.float32),  # BN1 [sum,sumsq] -> [mu,rstd]
                pltpu.VMEM((2, LANE), jnp.float32),    # BN2 [sum,sumsq] -> [mu,rstd]
            ]),
        compiler_params=pltpu.CompilerParams(
            dimension_semantics=("arbitrary", "arbitrary")),
        cost_estimate=pl.CostEstimate(
            flops=2 * 3 * batch * LANE * (n_feat + LANE),
            transcendentals=batch * LANE,
            bytes_accessed=4 * (3 * b_pad * n_feat + b_pad * LANE + 2 * LANE * LANE)),
    )(x_p, w_slab)
    return out_p[:batch, :n_actions]


# ----------------------------------------------------------------------------
# Dispatcher.
# ----------------------------------------------------------------------------
def actor_low_forward(x, packed, *, tile_b=1024, force_tiled=False):
    """Forward pass.  `packed` is the pack_params(...) result (computed once)."""
    if force_tiled or x.shape[0] > RESIDENT_MAX_B:
        return _forward_tiled(x, packed["w_slab"], n_feat=packed["n_feat"],
                              n_actions=packed["n_actions"], tile_b=tile_b)
    return _forward_resident(x, packed["w_slab"], n_feat=packed["n_feat"],
                             n_actions=packed["n_actions"])


# ----------------------------------------------------------------------------
# Reference, init, test.
# ----------------------------------------------------------------------------
def init_params(key, n_states, n_actions, hidden=32):
    k1, k2, k3, k4 = jax.random.split(key, 4)
    # PyTorch _init_weights: Linear weight ~ N(0, 0.001), bias ~ U(-0.1, 0.1).
    # Weights stored as (in, out) (transposed vs. torch's (out, in)).
    w1 = 0.001 * jax.random.normal(k1, (n_states, hidden), jnp.float32)
    b1 = jax.random.uniform(k2, (1, hidden), jnp.float32, -0.1, 0.1)
    w2 = 0.001 * jax.random.normal(k3, (hidden, n_actions), jnp.float32)
    b2 = jax.random.uniform(k4, (1, n_actions), jnp.float32, -0.1, 0.1)
    # BatchNorm affine params: gamma=1, beta=0 (PyTorch default init).
    g1 = jnp.ones((1, n_states), jnp.float32)
    be1 = jnp.zeros((1, n_states), jnp.float32)
    g2 = jnp.ones((1, hidden), jnp.float32)
    be2 = jnp.zeros((1, hidden), jnp.float32)
    return dict(w1=w1, b1=b1, w2=w2, b2=b2, g1=g1, be1=be1, g2=g2, be2=be2)


def actor_low_ref(x, p):
    """Pure-JAX reference with the original (unfolded, two-pass) semantics."""
    eps = 1e-5
    mu = x.mean(0, keepdims=True)
    var = ((x - mu) ** 2).mean(0, keepdims=True)
    y = (x - mu) / jnp.sqrt(var + eps) * p["g1"] + p["be1"]
    h = y @ p["w1"] + p["b1"]
    h = jnp.where(h > 0, h, 0.2 * h)
    mu2 = h.mean(0, keepdims=True)
    var2 = ((h - mu2) ** 2).mean(0, keepdims=True)
    z = (h - mu2) / jnp.sqrt(var2 + eps) * p["g2"] + p["be2"]
    o = z @ p["w2"] + p["b2"]
    o = jnp.where(o > 0, o, 0.2 * o)
    return jnp.tanh(o)


if __name__ == "__main__":
    n_states, n_actions, batch = 16, 8, 8

    key = jax.random.PRNGKey(0)
    kx, kp, kg, kx2 = jax.random.split(key, 4)
    x = jax.random.normal(kx, (batch, n_states), jnp.float32)
    params = init_params(kp, n_states, n_actions)
    packed = pack_params(params)          # once, at parameter-load time

    out = jax.block_until_ready(actor_low_forward(x, packed))
    ref = actor_low_ref(x, params)
    assert out.shape == (batch, n_actions)
    assert jnp.allclose(out, ref, atol=1e-5, rtol=1e-5), "mismatch vs JAX reference"

    # Non-trivial BN affine params exercise the (cached) parameter fold.
    kg1, kg2, kb1, kb2 = jax.random.split(kg, 4)
    params2 = dict(params)
    params2["g1"] = 1.0 + 0.3 * jax.random.normal(kg1, (1, n_states), jnp.float32)
    params2["g2"] = 1.0 + 0.3 * jax.random.normal(kg2, (1, 32), jnp.float32)
    params2["be1"] = 0.2 * jax.random.normal(kb1, (1, n_states), jnp.float32)
    params2["be2"] = 0.2 * jax.random.normal(kb2, (1, 32), jnp.float32)
    packed2 = pack_params(params2)
    out2 = jax.block_until_ready(actor_low_forward(x, packed2))
    ref2 = actor_low_ref(x, params2)
    assert jnp.allclose(out2, ref2, atol=1e-5, rtol=1e-5), "mismatch with BN affine fold"

    # Batch-tiled path (used automatically for B > RESIDENT_MAX_B): exercise the
    # 3-phase grid, cross-tile stat accumulation and partial-tile masking at a
    # small size (B=300, tile_b=128 -> 3 tiles, last one ragged).  Slightly
    # looser atol: one-pass variance + tile-wise summation reorder.
    xb = jax.random.normal(kx2, (300, n_states), jnp.float32)
    out3 = jax.block_until_ready(
        actor_low_forward(xb, packed2, tile_b=128, force_tiled=True))
    ref3 = actor_low_ref(xb, params2)
    assert out3.shape == (300, n_actions)
    assert jnp.allclose(out3, ref3, atol=2e-5, rtol=1e-5), "mismatch on tiled path"

    print("KERNEL_OK")
</pallas_src>

<mosaic_0001>
module attributes {stable_mosaic.version = 11 : i64} {
  func.func @_resident_kernel(%arg0: memref<8x16xf32, #tpu.memory_space<vmem>>, %arg1: memref<2x128x128xf32, #tpu.memory_space<vmem>>, %arg2: memref<8x128xf32, #tpu.memory_space<vmem>>) attributes {dimension_semantics = [], scalar_prefetch = 0 : i64, scratch_operands = 0 : i64, tpu.core_type = #tpu.core_type<tc>} {
    %c0 = arith.constant 0 : index
    %c0_0 = arith.constant 0 : index
    %0 = vector.load %arg0[%c0, %c0_0] : memref<8x16xf32, #tpu.memory_space<vmem>>, vector<8x16xf32>
    %cst = arith.constant dense<0.000000e+00> : vector<16xf32>
    %1 = vector.multi_reduction <add>, %0, %cst [0] : vector<8x16xf32> to vector<16xf32>
    %2 = vector.shape_cast %1 : vector<16xf32> to vector<1x16xf32>
    %cst_1 = arith.constant 8.000000e+00 : f32
    %3 = vector.broadcast %cst_1 : f32 to vector<1x16xf32>
    %4 = arith.divf %2, %3 : vector<1x16xf32>
    %5 = vector.broadcast %4 : vector<1x16xf32> to vector<8x16xf32>
    %6 = arith.subf %0, %5 : vector<8x16xf32>
    %7 = arith.mulf %6, %6 : vector<8x16xf32>
    %cst_2 = arith.constant dense<0.000000e+00> : vector<16xf32>
    %8 = vector.multi_reduction <add>, %7, %cst_2 [0] : vector<8x16xf32> to vector<16xf32>
    %9 = vector.shape_cast %8 : vector<16xf32> to vector<1x16xf32>
    %cst_3 = arith.constant 8.000000e+00 : f32
    %10 = vector.broadcast %cst_3 : f32 to vector<1x16xf32>
    %11 = arith.divf %9, %10 : vector<1x16xf32>
    %cst_4 = arith.constant 9.99999974E-6 : f32
    %12 = vector.broadcast %cst_4 : f32 to vector<1x16xf32>
    %13 = arith.addf %11, %12 : vector<1x16xf32>
    %14 = math.rsqrt %13 : vector<1x16xf32>
    %15 = vector.broadcast %14 : vector<1x16xf32> to vector<8x16xf32>
    %16 = arith.mulf %6, %15 : vector<8x16xf32>
    %c0_5 = arith.constant 0 : index
    %c0_6 = arith.constant 0 : index
    %c0_7 = arith.constant 0 : index
    %17 = vector.load %arg1[%c0_5, %c0_6, %c0_7] : memref<2x128x128xf32, #tpu.memory_space<vmem>>, vector<1x16x128xf32>
    %18 = vector.shape_cast %17 : vector<1x16x128xf32> to vector<16x128xf32>
    %cst_8 = arith.constant dense<0.000000e+00> : vector<8x128xf32>
    %19 = tpu.matmul %16, %18, %cst_8 {dimension_numbers = #tpu.dot_dimension_numbers<[1], [0], [0], [1], [0, 0, 1, 1], [], []>} : vector<8x16xf32>, vector<16x128xf32>, vector<8x128xf32> -> vector<8x128xf32>
    %c0_9 = arith.constant 0 : index
    %c120 = arith.constant 120 : index
    %c0_10 = arith.constant 0 : index
    %20 = vector.load %arg1[%c0_9, %c120, %c0_10] : memref<2x128x128xf32, #tpu.memory_space<vmem>>, vector<1x1x128xf32>
    %21 = vector.shape_cast %20 : vector<1x1x128xf32> to vector<1x128xf32>
    %22 = vector.broadcast %21 : vector<1x128xf32> to vector<8x128xf32>
    %23 = arith.addf %19, %22 : vector<8x128xf32>
    %cst_11 = arith.constant 2.000000e-01 : f32
    %24 = vector.broadcast %cst_11 : f32 to vector<8x128xf32>
    %25 = arith.mulf %24, %23 : vector<8x128xf32>
    %26 = arith.maximumf %23, %25 : vector<8x128xf32>
    %cst_12 = arith.constant dense<0.000000e+00> : vector<128xf32>
    %27 = vector.multi_reduction <add>, %26, %cst_12 [0] : vector<8x128xf32> to vector<128xf32>
    %28 = vector.shape_cast %27 : vector<128xf32> to vector<1x128xf32>
    %cst_13 = arith.constant 8.000000e+00 : f32
    %29 = vector.broadcast %cst_13 : f32 to vector<1x128xf32>
    %30 = arith.divf %28, %29 : vector<1x128xf32>
    %31 = vector.broadcast %30 : vector<1x128xf32> to vector<8x128xf32>
    %32 = arith.subf %26, %31 : vector<8x128xf32>
    %33 = arith.mulf %32, %32 : vector<8x128xf32>
    %cst_14 = arith.constant dense<0.000000e+00> : vector<128xf32>
    %34 = vector.multi_reduction <add>, %33, %cst_14 [0] : vector<8x128xf32> to vector<128xf32>
    %35 = vector.shape_cast %34 : vector<128xf32> to vector<1x128xf32>
    %cst_15 = arith.constant 8.000000e+00 : f32
    %36 = vector.broadcast %cst_15 : f32 to vector<1x128xf32>
    %37 = arith.divf %35, %36 : vector<1x128xf32>
    %cst_16 = arith.constant 9.99999974E-6 : f32
    %38 = vector.broadcast %cst_16 : f32 to vector<1x128xf32>
    %39 = arith.addf %37, %38 : vector<1x128xf32>
    %40 = math.rsqrt %39 : vector<1x128xf32>
    %41 = vector.broadcast %40 : vector<1x128xf32> to vector<8x128xf32>
    %42 = arith.mulf %32, %41 : vector<8x128xf32>
    %c1 = arith.constant 1 : index
    %c0_17 = arith.constant 0 : index
    %c0_18 = arith.constant 0 : index
    %43 = vector.load %arg1[%c1, %c0_17, %c0_18] : memref<2x128x128xf32, #tpu.memory_space<vmem>>, vector<1x128x128xf32>
    %44 = vector.shape_cast %43 : vector<1x128x128xf32> to vector<128x128xf32>
    %cst_19 = arith.constant dense<0.000000e+00> : vector<8x128xf32>
    %45 = tpu.matmul %42, %44, %cst_19 {dimension_numbers = #tpu.dot_dimension_numbers<[1], [0], [0], [1], [0, 0, 1, 1], [], []>} : vector<8x128xf32>, vector<128x128xf32>, vector<8x128xf32> -> vector<8x128xf32>
    %c1_20 = arith.constant 1 : index
    %c120_21 = arith.constant 120 : index
    %c0_22 = arith.constant 0 : index
    %46 = vector.load %arg1[%c1_20, %c120_21, %c0_22] : memref<2x128x128xf32, #tpu.memory_space<vmem>>, vector<1x1x128xf32>
    %47 = vector.shape_cast %46 : vector<1x1x128xf32> to vector<1x128xf32>
    %48 = vector.broadcast %47 : vector<1x128xf32> to vector<8x128xf32>
    %49 = arith.addf %45, %48 : vector<8x128xf32>
    %cst_23 = arith.constant 2.000000e-01 : f32
    %50 = vector.broadcast %cst_23 : f32 to vector<8x128xf32>
    %51 = arith.mulf %50, %49 : vector<8x128xf32>
    %52 = arith.maximumf %49, %51 : vector<8x128xf32>
    %53 = math.tanh %52 : vector<8x128xf32>
    %c0_24 = arith.constant 0 : index
    %c0_25 = arith.constant 0 : index
    %54 = vector.load %arg2[%c0_24, %c0_25] : memref<8x128xf32, #tpu.memory_space<vmem>>, vector<8x128xf32>
    tpu.vector_store %arg2[%c0_24, %c0_25], %53 {strides = array<i32>} : memref<8x128xf32, #tpu.memory_space<vmem>>, vector<8x128xf32>,
    return
  }
}

</mosaic_0001>

<bundles_post_ra>
// kernel: _forward_resident.1
= control target key start
LH: loop header
LB: loop body
LE: loop exit
PB: predicated region body
PF: predicated region fallthrough
CT: control target
= control target key end

     0   :  { %7 = vsyncpa [#allocation3], 0  ;;  %s531_s0 = inlined_call_operand.hbm [shape: f32[8,16], index: 0, kind: input, shape index: {}]   ;;  %s532_s1 = inlined_call_operand.hbm [shape: f32[2,128,128], index: 1, kind: input, shape index: {}]   ;;  %s533_s2 = inlined_call_operand.hbm [shape: f32[8,128], index: 2, kind: output, shape index: {}]  }
   0x1   :  { %8 = vsyncpa [#allocation6], 0 }
   0x2   :  { %9 = vsyncpa [#allocation4], 0  ;;  %s453_s9 = smov [#allocation2]   ;;  %s454_s11 = smov [#allocation5]  }
   0x3   :  { %s16_s10 = sshll.u32 %s453_s9, 4  ;;  %s25_s12 = sshll.u32 %s454_s11, 4  ;;  %s17_s10 = int_to_ptr.vmem [resolvable:$true] %s16_s10  ;;  %s476_s12 = int_to_ptr.vmem [resolvable:$true] %s25_s12 }
   0x4   :  { %s381_s15 = scalar_lea.hbm %s531_s0, 128 }
   0x5   :  { %p382_p0 = scmp.ne.s32.totalorder %s531_s0, %s381_s15  ;;  %p385_p1 = scmp.lt.u32.totalorder %s381_s15, %s531_s0 }
   0x7   :  { %p387_p2 = pnand %p385_p1, %p382_p0 }
   0x9   :  { %390 = shalt.err (!%p387_p2)
}
   0xa   :  { %s391_s20 = scalar_lea.vmem %s17_s10, 128  ;;  %p396_p4 = scmp.lt.s32.totalorder %s17_s10, %s17_s10 }
   0xb   :  { %p392_p3 = scmp.ne.s32.totalorder %s17_s10, %s391_s20  ;;  %p397_p5 = scmp.lt.s32.totalorder %s391_s20, %s391_s20 }
   0xd   :  { %p398_p6 = por %p397_p5, %p396_p4 }
   0xf   :  { %p399_p7 = pnand %p398_p6, %p392_p3 }
  0x11   :  { %402 = shalt.err (!%p399_p7)
}
  0x12   :  { %19 = dma.hbm_to_vmem [thread:$0]  %s531_s0, 128, %s17_s10, [#allocation3]  }
  0x13   :  { %s403_s25 = scalar_lea.hbm %s532_s1, 4096 }
  0x14   :  { %p404_p8 = scmp.ne.s32.totalorder %s532_s1, %s403_s25  ;;  %p407_p9 = scmp.lt.u32.totalorder %s403_s25, %s532_s1 }
  0x16   :  { %p409_p10 = pnand %p407_p9, %p404_p8 }
  0x18   :  { %412 = shalt.err (!%p409_p10)
}
  0x19   :  { %s413_s30 = scalar_lea.vmem %s476_s12, 4096  ;;  %p418_p12 = scmp.lt.s32.totalorder %s476_s12, %s476_s12 }
  0x1a   :  { %p414_p11 = scmp.ne.s32.totalorder %s476_s12, %s413_s30  ;;  %p419_p13 = scmp.lt.s32.totalorder %s413_s30, %s413_s30 }
  0x1c   :  { %p420_p0 = por %p419_p13, %p418_p12 }
  0x1e   :  { %p421_p1 = pnand %p420_p0, %p414_p11 }
  0x20   :  { %424 = shalt.err (!%p421_p1)
}
  0x21   :  { %s455_s0 = smov 128   ;;  %s456_s3 = smov 8  }
  0x22   :  { %31 = dma.hbm_to_vmem [thread:$0]  %s532_s1, 4096, %s476_s12, [#allocation6], %s455_s0, %s455_s0, %s456_s3  }
  0x23   :  { %447 = dma.done.wait [#allocation3], 128  }
  0x24   :  { %448 = vsyncadd [#allocation3], 4294967168 }
  0x25   :  { %449 = dma.done.wait [#allocation6], 4096  }
  0x26   :  { %450 = vsyncadd [#allocation6], 4294963200  ;;  %v457_v0 = vmov 0.0|0.0   ;;  %vm458_vm0 = vmmov 0   ;;  %v459_v1 = vmov 0.0   ;;  %vm39_vm1 = vcmask 130048  }
  0x27   :  { %340 = vmatprep.subr.bf16.mxu0 %v457_v0  ;;  %302 = vmatprep.mubr.msk.f32.mxu0 %vm458_vm0, %v459_v1  ;;  %v62_v2 = vld [vmem:[#allocation5] sm:$0xff]  ;;  %v63_v3 = vld [vmem:[#allocation5 + $0x8] sm:$0xff]  ;;  %v38_v4 = vld [vmem:[#allocation2] sm:$0xff]  ;;  %s460_s1 = smov [#allocation7]  }
  0x28   :  { %343 = vmatprep.subr.bf16.mxu1 %v457_v0  ;;  %337 = vmatprep.mubr.msk.f32.mxu1 %vm458_vm0, %v459_v1  ;;  %v341_v5 = vpack.c.bf16 %v63_v3, %v62_v2  ;;  %v40_v6 = vsel %vm39_vm1, %v38_v4, 0.0  ;;  %v164_v27 = vld [vmem:[#allocation5 + $0x80] sm:$0xff]  ;;  %v165_v28 = vld [vmem:[#allocation5 + $0x88] sm:$0xff]  ;;  %v166_v29 = vld [vmem:[#allocation5 + $0x90] sm:$0xff]  ;;  %s265_s6 = sshll.u32 %s460_s1, 4  ;;  %s266_s6 = int_to_ptr.vmem [resolvable:$true] %s265_s6 }
  0x29   :  { %v41_v7 = vrot.slane %v40_v6, 4  ;;  %v344_v30 = vpack.c.bf16 %v165_v28, %v164_v27  ;;  %v167_v31 = vld [vmem:[#allocation5 + $0x98] sm:$0xff]  ;;  %v168_v33 = vld [vmem:[#allocation5 + $0xa0] sm:$0xff]  ;;  %v169_v34 = vld [vmem:[#allocation5 + $0xa8] sm:$0xff]  ;;  %s425_s7 = scalar_lea.vmem %s266_s6, 128  ;;  %p430_p3 = scmp.lt.s32.totalorder %s266_s6, %s266_s6 }
  0x2a   :  { %342 = vmatpush3.bf16.msra.mxu0 %v341_v5  ;;  %v347_v32 = vpack.c.bf16 %v167_v31, %v166_v29  ;;  %v350_v35 = vpack.c.bf16 %v169_v34, %v168_v33  ;;  %v170_v36 = vld [vmem:[#allocation5 + $0xb0] sm:$0xff]  ;;  %v171_v37 = vld [vmem:[#allocation5 + $0xb8] sm:$0xff]  ;;  %v172_v39 = vld [vmem:[#allocation5 + $0xc0] sm:$0xff]  ;;  %p426_p2 = scmp.ne.s32.totalorder %s266_s6, %s425_s7  ;;  %p431_p4 = scmp.lt.s32.totalorder %s425_s7, %s425_s7 }
  0x2b   :  { %v42_v8 = vadd.f32 %v41_v7, %v40_v6  ;;  %345 = vmatpush3.bf16.msra.mxu1 %v344_v30  ;;  %v353_v38 = vpack.c.bf16 %v171_v37, %v170_v36  ;;  %v173_v40 = vld [vmem:[#allocation5 + $0xc8] sm:$0xff]  ;;  %v174_v42 = vld [vmem:[#allocation5 + $0xd0] sm:$0xff]  ;;  %v175_v43 = vld [vmem:[#allocation5 + $0xd8] sm:$0xff] }
  0x2c   :  { %346 = vmatprep.subr.bf16.mxu1 %v457_v0  ;;  %v356_v41 = vpack.c.bf16 %v173_v40, %v172_v39  ;;  %v359_v44 = vpack.c.bf16 %v175_v43, %v174_v42  ;;  %v176_v45 = vld [vmem:[#allocation5 + $0xe0] sm:$0xff]  ;;  %v177_v46 = vld [vmem:[#allocation5 + $0xe8] sm:$0xff]  ;;  %v178_v48 = vld [vmem:[#allocation5 + $0xf0] sm:$0xff]  ;;  %p432_p5 = por %p431_p4, %p430_p3 }
  0x2d   :  { %v43_v9 = vrot.slane %v42_v8, 2  ;;  %v362_v47 = vpack.c.bf16 %v177_v46, %v176_v45  ;;  %v179_v49 = vld [vmem:[#allocation5 + $0xf8] sm:$0xff] }
  0x2e   :  { %v365_v50 = vpack.c.bf16 %v179_v49, %v178_v48  ;;  %v275_v51 = vld [vmem:[#allocation5 + $0x78] ss:$0 sm:$0xff]  ;;  %p433_p6 = pnand %p432_p5, %p426_p2 }
  0x2f   :  { %v44_v10 = vadd.f32 %v43_v9, %v42_v8  ;;  %348 = vmatpush3.bf16.msra.mxu1 %v347_v32 }
  0x30   :  { %349 = vmatprep.subr.bf16.mxu1 %v457_v0 }
  0x31   :  { %v45_v11 = vrot.slane %v44_v10, 1 }
  0x33   :  { %v46_v12 = vadd.f32 %v45_v11, %v44_v10  ;;  %351 = vmatpush3.bf16.msra.mxu1 %v350_v35 }
  0x34   :  { %352 = vmatprep.subr.bf16.mxu1 %v457_v0 }
  0x35   :  { %v48_v13 = vmul.f32 0.125, %v46_v12  ;;  %v277_v12 = vld [vmem:[#allocation5 + $0xf8] ss:$0 sm:$0xff] }
  0x37   :  { %v49_v14 = vsub.f32 %v38_v4, %v48_v13  ;;  %354 = vmatpush3.bf16.msra.mxu1 %v353_v38 }
  0x38   :  { %355 = vmatprep.subr.bf16.mxu1 %v457_v0 }
  0x39   :  { %v50_v15 = vmul.f32 %v49_v14, %v49_v14 }
  0x3b   :  { %v51_v16 = vsel %vm39_vm1, %v50_v15, 0.0  ;;  %357 = vmatpush3.bf16.msra.mxu1 %v356_v41 }
  0x3c   :  { %v52_v17 = vrot.slane %v51_v16, 4  ;;  %358 = vmatprep.subr.bf16.mxu1 %v457_v0 }
  0x3e   :  { %v53_v18 = vadd.f32 %v52_v17, %v51_v16 }
  0x3f   :  { %360 = vmatpush3.bf16.msra.mxu1 %v359_v44 }
  0x40   :  { %v54_v19 = vrot.slane %v53_v18, 2  ;;  %361 = vmatprep.subr.bf16.mxu1 %v457_v0 }
  0x42   :  { %v55_v20 = vadd.f32 %v54_v19, %v53_v18 }
  0x43   :  { %363 = vmatpush3.bf16.msra.mxu1 %v362_v47 }
  0x44   :  { %v56_v21 = vrot.slane %v55_v20, 1  ;;  %364 = vmatprep.subr.bf16.mxu1 %v457_v0 }
  0x46   :  { %v57_v22 = vadd.f32 %v56_v21, %v55_v20 }
  0x47   :  { %366 = vmatpush3.bf16.msra.mxu1 %v365_v50 }
  0x48   :  { %v58_v23 = vmul.f32 0.125, %v57_v22 }
  0x4a   :  { %v59_v24 = vadd.f32 1e-05, %v58_v23 }
  0x4c   :  { %375 = vrsqrt.f32 %v59_v24 }
  0x56   :  { %v376_v25 = vpop.eup %375 }
  0x57   :  { %v61_v26 = vmul.f32 %v376_v25, %v49_v14 }
  0x59   :  { %303 = vmatmul.mubr.msk.f32.vlgmr.msra.gmra.mrb[0].mxu0 %vm39_vm1, %v61_v26 }
 0x12c   :  { %v138_v52 = vpop.f32.mrb[0].mxu0 }
 0x12d   :  { %v139_v53 = vadd.f32 %v275_v51, %v138_v52  ;;  %v304_v54 = vpop.f32.mrb[1].mxu0 }
 0x12f   :  { %v142_v55 = vmul.f32 0.2, %v139_v53 }
 0x131   :  { %v143_v56 = vmax.f32 %v139_v53, %v142_v55 }
 0x133   :  { %v144_v57 = vrot.slane %v143_v56, 4 }
 0x135   :  { %v145_v58 = vadd.f32 %v144_v57, %v143_v56 }
 0x137   :  { %v146_v59 = vrot.slane %v145_v58, 2 }
 0x139   :  { %v147_v60 = vadd.f32 %v146_v59, %v145_v58 }
 0x13b   :  { %v148_v61 = vrot.slane %v147_v60, 1 }
 0x13d   :  { %v149_v62 = vadd.f32 %v148_v61, %v147_v60 }
 0x13f   :  { %v150_v63 = vmul.f32 0.125, %v149_v62 }
 0x141   :  { %v151_v1 = vsub.f32 %v143_v56, %v150_v63 }
 0x143   :  { %v152_v2 = vmul.f32 %v151_v1, %v151_v1 }
 0x145   :  { %v153_v3 = vrot.slane %v152_v2, 4 }
 0x147   :  { %v154_v4 = vadd.f32 %v153_v3, %v152_v2 }
 0x149   :  { %v155_v5 = vrot.slane %v154_v4, 2 }
 0x14b   :  { %v156_v0 = vadd.f32 %v155_v5, %v154_v4 }
 0x14d   :  { %v157_v6 = vrot.slane %v156_v0, 1 }
 0x14f   :  { %v158_v7 = vadd.f32 %v157_v6, %v156_v0 }
 0x151   :  { %v159_v8 = vmul.f32 0.125, %v158_v7 }
 0x153   :  { %v160_v9 = vadd.f32 1e-05, %v159_v8 }
 0x155   :  { %377 = vrsqrt.f32 %v160_v9 }
 0x15f   :  { %v378_v10 = vpop.eup %377 }
 0x160   :  { %v162_v11 = vmul.f32 %v378_v10, %v151_v1 }
 0x162   :  { %338 = vmatmul.mubr.f32.vlgmr.msra.gmra.mrb[0].mxu1 %v162_v11 }
 0x235   :  { %v251_v13 = vpop.f32.mrb[0].mxu1 }
 0x236   :  { %v252_v14 = vadd.f32 %v277_v12, %v251_v13  ;;  %v339_v15 = vpop.f32.mrb[1].mxu1 }
 0x238   :  { %v255_v16 = vmul.f32 0.2, %v252_v14 }
 0x23a   :  { %v256_v17 = vmax.f32 %v252_v14, %v255_v16 }
 0x23c   :  { %379 = vtanh.f32 %v256_v17 }
 0x246   :  { %v380_v18 = vpop.eup %379 }
 0x247   :  { %258 = vst [vmem:[#allocation7] sm:$0xff] %v380_v18 }
 0x248   :  { %436 = shalt.err (!%p433_p6)
}
 0x249   :  { %s437_s10 = scalar_lea.hbm %s533_s2, 128 }
 0x24a   :  { %p438_p7 = scmp.ne.s32.totalorder %s533_s2, %s437_s10  ;;  %p441_p8 = scmp.lt.u32.totalorder %s437_s10, %s533_s2 }
 0x24c   :  { %p443_p9 = pnand %p441_p8, %p438_p7 }
 0x24e   :  { %446 = shalt.err (!%p443_p9)
}
 0x24f   :  { %268 = dma.vmem_to_hbm [thread:$0]  %s266_s6, 128, %s533_s2, [#allocation4]  }
 0x250   :  { %451 = dma.done.wait [#allocation4], 128  }
 0x251   :  { %452 = vsyncadd [#allocation4], 4294967168 }
 0x252   :  { %272 = vsyncpa [#allocation3], 1 }
 0x253   :  { %273 = vsyncpa [#allocation6], 1 }
 0x254   :  { %274 = vsyncpa [#allocation4], 1 }

</bundles_post_ra>
